<compile_context>
chip_gen: v6e
topology: v6e:2x2x1
jax: 0.10.0
libtpu: 0.0.40
codegen_flags: <defaults>
</compile_context>

<pallas_src>
import math

import jax
import jax.numpy as jnp
from jax import lax
from jax.experimental import pallas as pl
from jax.experimental.pallas import tpu as pltpu


def _make_kernel(s, m1, m2, m3):
    """Build the per-tile kernel with the margin constants baked in."""
    cos_m = float(math.cos(m2))
    sin_m = float(math.sin(m2))
    s = float(s)
    m3 = float(m3)

    if m1 == 1.0 and m3 == 0.0:
        # ArcFace path.
        def kernel(labels_ref, logits_ref, out_ref):
            x = logits_ref[...]                          # (tb, tc) float32
            lab = labels_ref[...]                        # (tb, 1) int32
            tile_c = x.shape[1]
            # Global class index of each lane in this block.
            col = pl.program_id(1) * tile_c + lax.broadcasted_iota(
                jnp.int32, x.shape, 1)
            # label == -1 (ignored row) never matches since col >= 0.
            is_target = col == lab
            # cos(arccos(x) + m2) = x*cos(m2) - sqrt(1 - x^2)*sin(m2)
            sin_theta = jnp.sqrt(jnp.maximum(1.0 - x * x, 0.0))
            target_logit = x * cos_m - sin_theta * sin_m
            out_ref[...] = (jnp.where(is_target, target_logit, x) * s).astype(
                out_ref.dtype)
    elif m3 > 0.0:
        # CosFace path.
        def kernel(labels_ref, logits_ref, out_ref):
            x = logits_ref[...]
            lab = labels_ref[...]
            tile_c = x.shape[1]
            col = pl.program_id(1) * tile_c + lax.broadcasted_iota(
                jnp.int32, x.shape, 1)
            is_target = col == lab
            out_ref[...] = (jnp.where(is_target, x - m3, x) * s).astype(
                out_ref.dtype)
    else:
        raise ValueError("unsupported margin combination (matches PyTorch `raise`)")

    return kernel


def combined_margin_loss(logits, labels, *, s=64.0, m1=1.0, m2=0.5, m3=0.0,
                         tile_b=512, tile_c=2048, out_dtype=None):
    """Apply the combined margin transform to `logits` given `labels`.

    logits: (B, C) float32 cosine logits in [-1, 1].
    labels: (B,)   int32, target class per row, -1 to skip the row.
    out_dtype: optional output dtype (e.g. jnp.bfloat16 to halve write traffic);
               when it matches logits.dtype the output aliases the logits buffer.
    Returns: (B, C) margin-adjusted, scaled logits.
    """
    B, C = logits.shape
    out_dtype = logits.dtype if out_dtype is None else jnp.dtype(out_dtype)
    labels2d = labels.reshape(B, 1).astype(jnp.int32)

    # Clamp tiles to the array extents (full-dim blocks are always legal);
    # otherwise tiles stay (8, 128)-aligned and partial edge blocks are masked.
    if tile_b >= B:
        tile_b = B
    if tile_c >= C:
        tile_c = C
    assert tile_b == B or tile_b % 8 == 0, "tile_b must be a multiple of 8"
    assert tile_c == C or tile_c % 128 == 0, "tile_c must be a multiple of 128"

    grid = (pl.cdiv(B, tile_b), pl.cdiv(C, tile_c))
    kernel = _make_kernel(s, m1, m2, m3)

    # Alias logits (input index 1) to the output when dtypes match: PyTorch
    # mutates logits in place, and this avoids a second BxC HBM buffer when the
    # caller jits with donation.
    aliases = {1: 0} if out_dtype == logits.dtype else {}

    return pl.pallas_call(
        kernel,
        out_shape=jax.ShapeDtypeStruct((B, C), out_dtype),
        grid_spec=pltpu.PrefetchScalarGridSpec(
            num_scalar_prefetch=0,
            grid=grid,
            in_specs=[
                pl.BlockSpec((tile_b, 1), lambda i, j: (i, 0)),        # labels
                pl.BlockSpec((tile_b, tile_c), lambda i, j: (i, j)),   # logits
            ],
            out_specs=pl.BlockSpec((tile_b, tile_c), lambda i, j: (i, j)),
        ),
        input_output_aliases=aliases,
        compiler_params=pltpu.CompilerParams(
            dimension_semantics=("parallel", "parallel"),
            vmem_limit_bytes=48 * 1024 * 1024),
    )(labels2d, logits)


if __name__ == "__main__":
    key = jax.random.PRNGKey(0)
    k_logits, k_labels, k_ignore = jax.random.split(key, 3)

    B, C = 16, 512  # small synthetic shapes; C a lane multiple

    # Cosine-similarity-like logits in (-1, 1).
    logits = jax.random.uniform(k_logits, (B, C), dtype=jnp.float32,
                                minval=-1.0, maxval=1.0)
    labels = jax.random.randint(k_labels, (B,), 0, C, dtype=jnp.int32)
    # Mark a couple of rows as ignored (label == -1), as the module supports.
    ignore_mask = jax.random.bernoulli(k_ignore, p=0.2, shape=(B,))
    labels = jnp.where(ignore_mask, -1, labels)

    # Independent copies so the (potentially aliased/donated) kernel inputs never
    # interfere with the reference arrays.
    logits_arc = logits * 1.0
    logits_cos = logits * 1.0

    # Pure-JAX references (computed before any kernel call).
    col = jnp.arange(C)[None, :]
    is_tgt = (col == labels[:, None]) & (labels[:, None] != -1)
    sin_theta = jnp.sqrt(jnp.maximum(1.0 - logits * logits, 0.0))
    tgt_arc = logits * math.cos(0.5) - sin_theta * math.sin(0.5)
    ref_arc = jnp.where(is_tgt, tgt_arc, logits) * 64.0
    ref_cos = jnp.where(is_tgt, logits - 0.4, logits) * 64.0
    jax.block_until_ready((ref_arc, ref_cos))

    # ArcFace configuration: s=64, m1=1.0, m2=0.5, m3=0.0
    out_arc = combined_margin_loss(logits_arc, labels, s=64.0, m1=1.0, m2=0.5, m3=0.0)
    jax.block_until_ready(out_arc)
    assert jnp.allclose(out_arc, ref_arc, atol=1e-3, rtol=1e-5), "ArcFace mismatch"

    # CosFace configuration: s=64, m1=1.0, m2=0.0, m3=0.4
    out_cos = combined_margin_loss(logits_cos, labels, s=64.0, m1=1.0, m2=0.0, m3=0.4)
    jax.block_until_ready(out_cos)
    assert jnp.allclose(out_cos, ref_cos, atol=1e-3, rtol=1e-5), "CosFace mismatch"

    print("KERNEL_OK")
</pallas_src>

<mosaic_0001>
module attributes {stable_mosaic.version = 11 : i64} {
  func.func @kernel(%arg0: i32, %arg1: i32, %arg2: memref<16x1xi32, #tpu.memory_space<vmem>>, %arg3: memref<16x512xf32, #tpu.memory_space<vmem>>, %arg4: memref<16x512xf32, #tpu.memory_space<vmem>>) attributes {dimension_semantics = [#tpu.dimension_semantics<parallel>, #tpu.dimension_semantics<parallel>], iteration_bounds = array<i64: 1, 1>, scalar_prefetch = 0 : i64, scratch_operands = 0 : i64, tpu.core_type = #tpu.core_type<tc>, window_params = [{transform_indices = @transform_0, window_bounds = array<i64: 16, 1>}, {transform_indices = @transform_1, window_bounds = array<i64: 16, 512>}, {transform_indices = @transform_2, window_bounds = array<i64: 16, 512>}]} {
    %c0 = arith.constant 0 : index
    %c0_0 = arith.constant 0 : index
    %0 = vector.load %arg3[%c0, %c0_0] : memref<16x512xf32, #tpu.memory_space<vmem>>, vector<16x512xf32>
    %c0_1 = arith.constant 0 : index
    %c0_2 = arith.constant 0 : index
    %1 = vector.load %arg2[%c0_1, %c0_2] : memref<16x1xi32, #tpu.memory_space<vmem>>, vector<16x1xi32>
    %c512_i32 = arith.constant 512 : i32
    %2 = arith.muli %arg1, %c512_i32 : i32
    %3 = tpu.iota {dimensions = array<i32: 1>} : vector<16x512xi32>
    %4 = vector.broadcast %2 : i32 to vector<16x512xi32>
    %5 = arith.addi %4, %3 : vector<16x512xi32>
    %6 = vector.broadcast %1 : vector<16x1xi32> to vector<16x512xi32>
    %7 = arith.cmpi eq, %5, %6 : vector<16x512xi32>
    %8 = arith.mulf %0, %0 : vector<16x512xf32>
    %cst = arith.constant 1.000000e+00 : f32
    %9 = vector.broadcast %cst : f32 to vector<16x512xf32>
    %10 = arith.subf %9, %8 : vector<16x512xf32>
    %cst_3 = arith.constant 0.000000e+00 : f32
    %11 = vector.broadcast %cst_3 : f32 to vector<16x512xf32>
    %12 = arith.maximumf %10, %11 : vector<16x512xf32>
    %13 = math.sqrt %12 : vector<16x512xf32>
    %cst_4 = arith.constant 0.87758255 : f32
    %14 = vector.broadcast %cst_4 : f32 to vector<16x512xf32>
    %15 = arith.mulf %0, %14 : vector<16x512xf32>
    %cst_5 = arith.constant 0.47942555 : f32
    %16 = vector.broadcast %cst_5 : f32 to vector<16x512xf32>
    %17 = arith.mulf %13, %16 : vector<16x512xf32>
    %18 = arith.subf %15, %17 : vector<16x512xf32>
    %19 = arith.select %7, %18, %0 : vector<16x512xi1>, vector<16x512xf32>
    %cst_6 = arith.constant 6.400000e+01 : f32
    %20 = vector.broadcast %cst_6 : f32 to vector<16x512xf32>
    %21 = arith.mulf %19, %20 : vector<16x512xf32>
    %c0_7 = arith.constant 0 : index
    %c0_8 = arith.constant 0 : index
    %22 = vector.load %arg4[%c0_7, %c0_8] : memref<16x512xf32, #tpu.memory_space<vmem>>, vector<16x512xf32>
    tpu.vector_store %arg4[%c0_7, %c0_8], %21 {strides = array<i32>} : memref<16x512xf32, #tpu.memory_space<vmem>>, vector<16x512xf32>,
    return
  }
  func.func @transform_0(%arg0: i32, %arg1: i32) -> (i32, i32) {
    %c0_i32 = arith.constant 0 : i32
    %c0_i32_0 = arith.constant 0 : i32
    return %arg0, %c0_i32 : i32, i32
  }
  func.func @transform_1(%arg0: i32, %arg1: i32) -> (i32, i32) {
    %c0_i32 = arith.constant 0 : i32
    return %arg0, %arg1 : i32, i32
  }
  func.func @transform_2(%arg0: i32, %arg1: i32) -> (i32, i32) {
    %c0_i32 = arith.constant 0 : i32
    return %arg0, %arg1 : i32, i32
  }
}

</mosaic_0001>

<bundles_post_ra>
// kernel: tpu_custom_call.1
= control target key start
LH: loop header
LB: loop body
LE: loop exit
PB: predicated region body
PF: predicated region fallthrough
CT: control target
= control target key end

     0   :  { %7 = vsyncpa [#allocation3], 0  ;;  %s463_s0 = inlined_call_operand.vmem [shape: s32[16,1], index: 0, kind: input, shape index: {}]   ;;  %s464_s1 = inlined_call_operand.hbm [shape: f32[16,512], index: 1, kind: input, shape index: {}, may-alias: {1,2}]   ;;  %s465_s2 = inlined_call_operand.hbm [shape: f32[16,512], index: 2, kind: output, shape index: {}, may-alias: {1,2}]  }
   0x1   :  { %8 = vsyncpa [#allocation4], 0  ;;  %s272_s9 = smov [#allocation2]  }
   0x2   :  { %s16_s10 = sshll.u32 %s272_s9, 4  ;;  %s17_s10 = int_to_ptr.vmem [resolvable:$true] %s16_s10 }
   0x3   :  { %s236_s11 = scalar_lea.vmem %s17_s10, 1024  ;;  %p241_p1 = scmp.lt.s32.totalorder %s17_s10, %s17_s10 }
   0x4   :  { %p237_p0 = scmp.ne.s32.totalorder %s17_s10, %s236_s11  ;;  %p242_p2 = scmp.lt.s32.totalorder %s236_s11, %s236_s11 }
   0x6   :  { %p243_p3 = por %p242_p2, %p241_p1 }
   0x8   :  { %p244_p4 = pnand %p243_p3, %p237_p0 }
   0xa   :  { %247 = shalt.err (!%p244_p4)
}
   0xb   :  { %s273_s12 = smov 512   ;;  %s274_s13 = smov 32  }
   0xc   :  { %22 = dma.hbm_to_vmem [thread:$0]  %s464_s1, 1024, %s17_s10, [#allocation3], %s273_s12, %s273_s12, %s274_s13  }
   0xd   :  { %268 = dma.done.wait [#allocation3], 1024  }
   0xe   :  { %269 = vsyncadd [#allocation3], 4294966272  ;;  %v275_v0 = vmov 0   ;;  %v34_v1 = vld [vmem:[%s463_s0] sm:$0xff]  ;;  %v35_v2 = vld [vmem:[%s463_s0 + $0x8] sm:$0xff]  ;;  %v37_v36 = vlaneseq  ;;  %s276_s0 = smov [#allocation5]  }
   0xf   :  { %211 = vset.pattern.permute.xlu0 %v275_v0  ;;  %v304_v3 = vld [vmem:[#allocation2] sm:$0xff]  ;;  %v306_v4 = vld [vmem:[#allocation2 + $0x8] sm:$0xff]  ;;  %v308_v5 = vld [vmem:[#allocation2 + $0x10] sm:$0xff]  ;;  %s194_s1 = sshll.u32 %s276_s0, 4  ;;  %s195_s1 = int_to_ptr.vmem [resolvable:$true] %s194_s1 }
  0x10   :  { %48 = vperm.xlu0 %211, %v34_v1   ;;  %v61_v6 = vmul.f32 %v304_v3, %v304_v3  ;;  %v312_v7 = vld [vmem:[#allocation2 + $0x18] sm:$0xff]  ;;  %v314_v8 = vld [vmem:[#allocation2 + $0x20] sm:$0xff]  ;;  %v62_v9 = vmul.f32 %v306_v4, %v306_v4  ;;  %v318_v10 = vld [vmem:[#allocation2 + $0x28] sm:$0xff]  ;;  %v63_v11 = vmul.f32 %v308_v5, %v308_v5  ;;  %v360_v41 = vand.u32 127, %v37_v36  ;;  %s248_s20 = scalar_lea.vmem %s195_s1, 1024  ;;  %p253_p6 = scmp.lt.s32.totalorder %s195_s1, %s195_s1 }
  0x11   :  { %v322_v12 = vld [vmem:[#allocation2 + $0x30] sm:$0xff]  ;;  %v64_v13 = vmul.f32 %v312_v7, %v312_v7  ;;  %v326_v15 = vld [vmem:[#allocation2 + $0x38] sm:$0xff]  ;;  %v65_v16 = vmul.f32 %v314_v8, %v314_v8  ;;  %v66_v17 = vmul.f32 %v318_v10, %v318_v10  ;;  %v364_v42 = vmul.f32 0.87758255, %v304_v3  ;;  %p249_p5 = scmp.ne.s32.totalorder %s195_s1, %s248_s20  ;;  %p254_p7 = scmp.lt.s32.totalorder %s248_s20, %s248_s20 }
  0x12   :  { %v69_v14 = vsub.f32 1.0, %v61_v6  ;;  %v70_v18 = vsub.f32 1.0, %v62_v9  ;;  %v67_v19 = vmul.f32 %v322_v12, %v322_v12  ;;  %v71_v20 = vsub.f32 1.0, %v63_v11 }
  0x13   :  { %v68_v21 = vmul.f32 %v326_v15, %v326_v15  ;;  %v72_v22 = vsub.f32 1.0, %v64_v13  ;;  %v73_v24 = vsub.f32 1.0, %v65_v16  ;;  %v74_v25 = vsub.f32 1.0, %v66_v17  ;;  %p255_p8 = por %p254_p7, %p253_p6 }
  0x14   :  { %51 = vperm.xlu0 %211, %v35_v2   ;;  %v336_v23 = vmax.f32 %v69_v14, 0.0  ;;  %v338_v26 = vmax.f32 %v70_v18, 0.0  ;;  %v75_v27 = vsub.f32 1.0, %v67_v19  ;;  %v340_v28 = vmax.f32 %v71_v20, 0.0 }
  0x15   :  { %v76_v29 = vsub.f32 1.0, %v68_v21  ;;  %v342_v30 = vmax.f32 %v72_v22, 0.0  ;;  %v345_v31 = vmax.f32 %v73_v24, 0.0  ;;  %v347_v32 = vmax.f32 %v74_v25, 0.0  ;;  %p256_p9 = pnand %p255_p8, %p249_p5 }
  0x16   :  { %212 = vrsqrt.f32 %v336_v23  ;;  %v350_v33 = vmax.f32 %v75_v27, 0.0  ;;  %vm87_vm0 = vcmp.eq.f32.partialorder %v336_v23, inf  ;;  %v367_v43 = vmul.f32 0.87758255, %v306_v4 }
  0x17   :  { %214 = vrsqrt.f32 %v338_v26  ;;  %v353_v34 = vmax.f32 %v76_v29, 0.0  ;;  %vm89_vm1 = vcmp.eq.f32.partialorder %v336_v23, 0.0  ;;  %v90_v45 = vand.u32 2147483648, %v336_v23 }
  0x18   :  { %216 = vrsqrt.f32 %v340_v28  ;;  %vm94_vm2 = vcmp.eq.f32.partialorder %v338_v26, inf  ;;  %vm96_vm3 = vcmp.eq.f32.partialorder %v338_v26, 0.0  ;;  %v97_v47 = vand.u32 2147483648, %v338_v26 }
  0x19   :  { %218 = vrsqrt.f32 %v342_v30  ;;  %vm101_vm4 = vcmp.eq.f32.partialorder %v340_v28, inf  ;;  %vm103_vm5 = vcmp.eq.f32.partialorder %v340_v28, 0.0  ;;  %v104_v48 = vand.u32 2147483648, %v340_v28 }
  0x1a   :  { %220 = vrsqrt.f32 %v345_v31  ;;  %vm108_vm6 = vcmp.eq.f32.partialorder %v342_v30, inf  ;;  %vm110_vm7 = vcmp.eq.f32.partialorder %v342_v30, 0.0  ;;  %v111_v51 = vand.u32 2147483648, %v342_v30 }
  0x1b   :  { %222 = vrsqrt.f32 %v347_v32  ;;  %vm115_vm8 = vcmp.eq.f32.partialorder %v345_v31, inf  ;;  %vm117_vm9 = vcmp.eq.f32.partialorder %v345_v31, 0.0  ;;  %v118_v56 = vand.u32 2147483648, %v345_v31 }
  0x1c   :  { %224 = vrsqrt.f32 %v350_v33  ;;  %vm122_vm10 = vcmp.eq.f32.partialorder %v347_v32, inf  ;;  %vm124_vm11 = vcmp.eq.f32.partialorder %v347_v32, 0.0  ;;  %v125_v61 = vand.u32 2147483648, %v347_v32 }
  0x1d   :  { %226 = vrsqrt.f32 %v353_v34  ;;  %vm129_vm12 = vcmp.eq.f32.partialorder %v350_v33, inf  ;;  %vm136_vm13 = vcmp.eq.f32.partialorder %v353_v34, inf  ;;  %vm131_vm14 = vcmp.eq.f32.partialorder %v350_v33, 0.0 }
  0x1e   :  { %v132_v2 = vand.u32 2147483648, %v350_v33  ;;  %vm138_vm15 = vcmp.eq.f32.partialorder %v353_v34, 0.0  ;;  %v139_v6 = vand.u32 2147483648, %v353_v34  ;;  %v143_v19 = vmul.f32 0.87758255, %v308_v5 }
  0x1f   :  { %v144_v21 = vmul.f32 0.87758255, %v312_v7  ;;  %v145_v22 = vmul.f32 0.87758255, %v314_v8 }
  0x23   :  { %v213_v35 = vpop.eup %212 }
  0x24   :  { %v215_v37 = vpop.eup %214  ;;  %v86_v50 = vmul.f32 %v213_v35, %v336_v23  ;;  %v148_v35 = vmul.f32 0.87758255, %v326_v15 }
  0x25   :  { %v217_v38 = vpop.eup %216  ;;  %v93_v52 = vmul.f32 %v215_v37, %v338_v26 }
  0x26   :  { %v219_v39 = vpop.eup %218  ;;  %v100_v53 = vmul.f32 %v217_v38, %v340_v28  ;;  %v88_v60 = vsel %vm87_vm0, %v336_v23, %v86_v50  ;;  %v146_v23 = vmul.f32 0.87758255, %v318_v10 }
  0x27   :  { %v221_v40 = vpop.eup %220  ;;  %v107_v54 = vmul.f32 %v219_v39, %v342_v30  ;;  %v95_v62 = vsel %vm94_vm2, %v338_v26, %v93_v52  ;;  %v91_v9 = vsel %vm89_vm1, %v90_v45, %v88_v60 }
  0x28   :  { %v223_v44 = vpop.eup %222  ;;  %v114_v55 = vmul.f32 %v221_v40, %v345_v31  ;;  %v102_v63 = vsel %vm101_vm4, %v340_v28, %v100_v53  ;;  %v98_v16 = vsel %vm96_vm3, %v97_v47, %v95_v62  ;;  %v149_v24 = vmul.f32 0.47942555, %v91_v9 }
  0x29   :  { %v225_v46 = vpop.eup %224  ;;  %v121_v57 = vmul.f32 %v223_v44, %v347_v32  ;;  %v109_v0 = vsel %vm108_vm6, %v342_v30, %v107_v54  ;;  %v105_v17 = vsel %vm103_vm5, %v104_v48, %v102_v63  ;;  %v150_v28 = vmul.f32 0.47942555, %v98_v16 }
  0x2a   :  { %v227_v49 = vpop.eup %226  ;;  %v128_v58 = vmul.f32 %v225_v46, %v350_v33  ;;  %v116_v1 = vsel %vm115_vm8, %v345_v31, %v114_v55  ;;  %v112_v18 = vsel %vm110_vm7, %v111_v51, %v109_v0  ;;  %v151_v29 = vmul.f32 0.47942555, %v105_v17 }
  0x2b   :  { %v135_v59 = vmul.f32 %v227_v49, %v353_v34  ;;  %v123_v11 = vsel %vm122_vm10, %v347_v32, %v121_v57  ;;  %v119_v20 = vsel %vm117_vm9, %v118_v56, %v116_v1  ;;  %v152_v30 = vmul.f32 0.47942555, %v112_v18 }
  0x2c   :  { %v130_v13 = vsel %vm129_vm12, %v350_v33, %v128_v58  ;;  %v126_v25 = vsel %vm124_vm11, %v125_v61, %v123_v11  ;;  %v147_v31 = vmul.f32 0.87758255, %v322_v12  ;;  %v153_v36 = vmul.f32 0.47942555, %v119_v20 }
  0x2d   :  { %v137_v14 = vsel %vm136_vm13, %v353_v34, %v135_v59  ;;  %v133_v26 = vsel %vm131_vm14, %v132_v2, %v130_v13  ;;  %v154_v37 = vmul.f32 0.47942555, %v126_v25  ;;  %v39_v32 = vadd.s32 128, %v360_v41 }
  0x2e   :  { %v140_v27 = vsel %vm138_vm15, %v139_v6, %v137_v14  ;;  %v155_v38 = vmul.f32 0.47942555, %v133_v26  ;;  %v40_v40 = vadd.s32 256, %v360_v41  ;;  %v41_v33 = vadd.s32 384, %v360_v41 }
  0x2f   :  { %v156_v39 = vmul.f32 0.47942555, %v140_v27  ;;  %v157_v34 = vsub.f32 %v364_v42, %v149_v24  ;;  %v158_v44 = vsub.f32 %v367_v43, %v150_v28  ;;  %v159_v45 = vsub.f32 %v143_v19, %v151_v29 }
  0x30   :  { %v160_v46 = vsub.f32 %v144_v21, %v152_v30  ;;  %v161_v48 = vsub.f32 %v145_v22, %v153_v36  ;;  %v162_v49 = vsub.f32 %v146_v23, %v154_v37  ;;  %v163_v50 = vsub.f32 %v147_v31, %v155_v38 }
  0x31   :  { %v164_v51 = vsub.f32 %v148_v35, %v156_v39 }
  0x8b   :  { %v49_v47 = vpop.permute.xlu0 %48 }
  0x8c   :  { %vm53_vm0 = vcmp.eq.s32.totalorder %v360_v41, %v49_v47  ;;  %vm54_vm1 = vcmp.eq.s32.totalorder %v39_v32, %v49_v47  ;;  %vm55_vm2 = vcmp.eq.s32.totalorder %v40_v40, %v49_v47  ;;  %vm56_vm3 = vcmp.eq.s32.totalorder %v41_v33, %v49_v47 }
  0x8d   :  { %v165_v52 = vsel %vm53_vm0, %v157_v34, %v304_v3  ;;  %v166_v53 = vsel %vm54_vm1, %v158_v44, %v306_v4  ;;  %v167_v42 = vsel %vm55_vm2, %v159_v45, %v308_v5  ;;  %v168_v43 = vsel %vm56_vm3, %v160_v46, %v312_v7 }
  0x8e   :  { %v173_v54 = vmul.f32 64.0, %v165_v52  ;;  %v174_v55 = vmul.f32 64.0, %v166_v53  ;;  %v175_v56 = vmul.f32 64.0, %v167_v42  ;;  %v176_v57 = vmul.f32 64.0, %v168_v43 }
  0x8f   :  { %v52_v58 = vpop.permute.xlu0 %51 }
  0x90   :  { %181 = vst [vmem:[#allocation5] sm:$0xff] %v173_v54  ;;  %vm57_vm4 = vcmp.eq.s32.totalorder %v360_v41, %v52_v58  ;;  %vm58_vm5 = vcmp.eq.s32.totalorder %v39_v32, %v52_v58  ;;  %vm59_vm6 = vcmp.eq.s32.totalorder %v40_v40, %v52_v58  ;;  %vm60_vm7 = vcmp.eq.s32.totalorder %v41_v33, %v52_v58 }
  0x91   :  { %182 = vst [vmem:[#allocation5 + $0x8] sm:$0xff] %v174_v55  ;;  %183 = vst [vmem:[#allocation5 + $0x10] sm:$0xff] %v175_v56  ;;  %v169_v3 = vsel %vm57_vm4, %v161_v48, %v314_v8  ;;  %v170_v4 = vsel %vm58_vm5, %v162_v49, %v318_v10  ;;  %v171_v5 = vsel %vm59_vm6, %v163_v50, %v322_v12 }
  0x92   :  { %184 = vst [vmem:[#allocation5 + $0x18] sm:$0xff] %v176_v57  ;;  %v172_v7 = vsel %vm60_vm7, %v164_v51, %v326_v15  ;;  %v177_v59 = vmul.f32 64.0, %v169_v3  ;;  %v178_v60 = vmul.f32 64.0, %v170_v4  ;;  %v179_v61 = vmul.f32 64.0, %v171_v5 }
  0x93   :  { %v180_v62 = vmul.f32 64.0, %v172_v7 }
  0x94   :  { %185 = vst [vmem:[#allocation5 + $0x20] sm:$0xff] %v177_v59  ;;  %186 = vst [vmem:[#allocation5 + $0x28] sm:$0xff] %v178_v60 }
  0x95   :  { %187 = vst [vmem:[#allocation5 + $0x30] sm:$0xff] %v179_v61  ;;  %188 = vst [vmem:[#allocation5 + $0x38] sm:$0xff] %v180_v62 }
  0x96   :  { %259 = shalt.err (!%p256_p9)
}
  0x97   :  { %200 = dma.vmem_to_hbm [thread:$0]  %s195_s1, 1024, %s465_s2, [#allocation4], %s273_s12, %s273_s12, %s274_s13  }
  0x98   :  { %270 = dma.done.wait [#allocation4], 1024  }
  0x99   :  { %271 = vsyncadd [#allocation4], 4294966272 }
  0x9a   :  { %204 = vsyncpa [#allocation3], 1 }
  0x9b   :  { %205 = vsyncpa [#allocation4], 1 }

</bundles_post_ra>
